<compile_context>
chip_gen: v7x
topology: tpu7x:2x2x1
jax: 0.10.0
libtpu: 0.0.40
codegen_flags: <defaults>
</compile_context>

<pallas_src>
import numpy as np

import jax
import jax.numpy as jnp
from jax import lax
from jax.experimental import pallas as pl
from jax.experimental.pallas import tpu as pltpu


# ---------------------------------------------------------------------------
# helpers
# ---------------------------------------------------------------------------
def _round_up(v, m):
    return (v + m - 1) // m * m


def _vreg_padded_bytes(shape, dtype):
    """Rough VMEM footprint of a block (last dim -> lanes, 2nd-last -> sublanes)."""
    itemsize = jnp.dtype(dtype).itemsize
    lead = 1
    for s in shape[:-2]:
        lead *= int(s)
    return lead * _round_up(int(shape[-2]), 8) * _round_up(int(shape[-1]), 128) * itemsize


def _vmem_capacity_bytes(default=64 << 20):
    try:
        info = pltpu.get_tpu_info()
        cap = getattr(info, "vmem_capacity_bytes", None)
        if cap:
            return int(cap)
    except Exception:
        pass
    return default


def _pick_tile_h(h_out, cap, granule):
    """Biggest tile: the full extent if it fits under `cap`, else the largest divisor of
    h_out that is a multiple of `granule` and <= cap (full extent fallback if none)."""
    if h_out <= cap:
        return h_out
    cands = [t for t in range(granule, cap + 1, granule) if h_out % t == 0]
    return cands[-1] if cands else h_out


# ---------------------------------------------------------------------------
# kernel
# ---------------------------------------------------------------------------
def _make_kernel(*, stride, dilation, padding, h_in, tile_h, kh_sz, wcin,
                 single_h_tile, lhs_dtype):
    rows_step = tile_h * stride

    def kernel(x_ref, rhs_ref, scale_ref, shift_ref, o_ref):
        # x_ref:     (1, Hx, W*Cin)              compute dtype (Hx = H if single tile, H+2p else)
        # rhs_ref:   (KH*W*Cin, Nout_p)          width-Toeplitz weights (resident)
        # scale_ref: (1, Nout_p)  f32            BN scale  (resident)
        # shift_ref: (1, Nout_p)  f32            BN shift  (resident)
        # o_ref:     (1, tile_h, Nout_p)         lane-dense output
        taps = []
        if single_h_tile:
            # One tile covers all output rows: boundary handling is fully static, so the
            # H zero-padding is folded here (in-register), not as an HBM jnp.pad pass.
            for kh in range(kh_sz):
                start = kh * dilation - padding
                ho_lo = 0 if start >= 0 else (-start + stride - 1) // stride
                if start > h_in - 1:
                    ho_hi = ho_lo
                else:
                    ho_hi = min(tile_h, (h_in - 1 - start) // stride + 1)
                n_valid = ho_hi - ho_lo
                if n_valid <= 0:
                    taps.append(jnp.zeros((tile_h, wcin), lhs_dtype))
                    continue
                src0 = start + ho_lo * stride
                if stride == 1:
                    valid = x_ref[0, pl.ds(src0, n_valid), :]
                else:
                    valid = x_ref[0, pl.ds(src0, n_valid, stride=stride), :]
                pieces = []
                if ho_lo > 0:
                    pieces.append(jnp.zeros((ho_lo, wcin), lhs_dtype))
                pieces.append(valid)
                if tile_h - ho_hi > 0:
                    pieces.append(jnp.zeros((tile_h - ho_hi, wcin), lhs_dtype))
                taps.append(jnp.concatenate(pieces, axis=0) if len(pieces) > 1 else valid)
        else:
            # H was pre-padded in the wrapper; one aligned dynamic row window per tile.
            t = pl.program_id(1)
            row0 = t * rows_step
            if rows_step % 8 == 0:
                row0 = pl.multiple_of(row0, 8)
            for kh in range(kh_sz):
                if stride == 1:
                    taps.append(x_ref[0, pl.ds(row0 + kh * dilation, tile_h), :])
                else:
                    taps.append(x_ref[0, pl.ds(row0 + kh * dilation, tile_h, stride=stride), :])

        # Fused MXU matmul: M = tile_h, K = KH*W*Cin, N = Wout*Cout (lane-dense), f32 acc.
        lhs = jnp.concatenate(taps, axis=-1) if kh_sz > 1 else taps[0]
        acc = jnp.dot(lhs, rhs_ref[...], preferred_element_type=jnp.float32)
        y = jnp.maximum(acc * scale_ref[...] + shift_ref[...], 0.0)   # BN + ReLU, f32
        o_ref[0] = y.astype(o_ref.dtype)                              # lane-dense store

    return kernel


# ---------------------------------------------------------------------------
# wrappers
# ---------------------------------------------------------------------------
def conv_bn_relu_nhwc(x_nhwc, weight_oihw, gamma, beta, running_mean, running_var,
                      *, stride=1, padding=1, dilation=1, eps=1e-5,
                      compute_dtype=jnp.bfloat16, out_dtype=None, max_tile_h=256):
    """Fused conv(bias=False) -> BN(eval) -> ReLU, channels-last in / channels-last out."""
    out_dtype = compute_dtype if out_dtype is None else out_dtype
    n, h, w, cin = x_nhwc.shape
    cout, cin_w, kh_sz, kw_sz = weight_oihw.shape
    assert cin_w == cin
    h_out = (h + 2 * padding - dilation * (kh_sz - 1) - 1) // stride + 1
    w_out = (w + 2 * padding - dilation * (kw_sz - 1) - 1) // stride + 1
    wcin = w * cin
    nout = w_out * cout
    nout_p = _round_up(nout, 128)            # lane-dense output guard

    # --- BN(eval) as f32 epilogue scale/shift (NOT folded into bf16 weights) -------------
    inv_std = lax.rsqrt(running_var.astype(jnp.float32) + eps)
    scale = gamma.astype(jnp.float32) * inv_std
    shift = beta.astype(jnp.float32) - running_mean.astype(jnp.float32) * scale
    scale_row = jnp.tile(scale, w_out).reshape(1, nout)      # index = wo*Cout + co
    shift_row = jnp.tile(shift, w_out).reshape(1, nout)

    # --- width-Toeplitz RHS: (KH*W*Cin, Wout*Cout), W zero-padding folded in as zero rows -
    w_hwio = jnp.transpose(weight_oihw.astype(jnp.float32), (2, 3, 1, 0))   # (KH,KW,Cin,Cout)
    sel = np.zeros((w, w_out, kw_sz), np.float32)
    for wo in range(w_out):
        for kw in range(kw_sz):
            w_in = wo * stride + kw * dilation - padding
            if 0 <= w_in < w:
                sel[w_in, wo, kw] = 1.0
    rhs = jnp.einsum("aok,hkic->haioc", jnp.asarray(sel), w_hwio)           # (KH,W,Cin,Wout,Cout)
    rhs = rhs.reshape(kh_sz * wcin, nout).astype(compute_dtype)
    if nout_p != nout:
        rhs = jnp.pad(rhs, ((0, 0), (0, nout_p - nout)))
        scale_row = jnp.pad(scale_row, ((0, 0), (0, nout_p - nout)))
        shift_row = jnp.pad(shift_row, ((0, 0), (0, nout_p - nout)))

    # --- tiling: biggest H tile that fits (demo: tile_h = h_out = 16, grid = (N,)) --------
    granule = 16 if jnp.dtype(out_dtype).itemsize == 2 else 8
    tile_h = _pick_tile_h(h_out, max_tile_h, granule)
    t_steps = h_out // tile_h
    single_h_tile = (t_steps == 1)

    x_rows = x_nhwc.astype(compute_dtype).reshape(n, h, wcin)   # fold (W,Cin) onto lanes
    if single_h_tile:
        x_in, hx = x_rows, h                                    # no HBM pad pass
        grid = (n,)
        x_map = lambda b: (b, 0, 0)
        c_map = lambda b: (0, 0)
        o_map = lambda b: (b, 0, 0)
        dims = ("parallel",)
    else:
        # TODO(synk): fold H padding into the kernel for the multi-tile-H path as well.
        x_in = jnp.pad(x_rows, ((0, 0), (padding, padding), (0, 0)))
        hx = h + 2 * padding
        grid = (n, t_steps)
        x_map = lambda b, t: (b, 0, 0)
        c_map = lambda b, t: (0, 0)
        o_map = lambda b, t: (b, t, 0)
        dims = ("parallel", "parallel")

    kernel = _make_kernel(stride=stride, dilation=dilation, padding=padding, h_in=h,
                          tile_h=tile_h, kh_sz=kh_sz, wcin=wcin,
                          single_h_tile=single_h_tile, lhs_dtype=compute_dtype)

    # --- VMEM budget: derived from block footprints, capped below physical VMEM ----------
    vmem_est = (2 * _vreg_padded_bytes((1, hx, wcin), compute_dtype)          # image slab
                + 2 * _vreg_padded_bytes((kh_sz * wcin, nout_p), compute_dtype)
                + 4 * _vreg_padded_bytes((1, nout_p), jnp.float32)
                + 2 * _vreg_padded_bytes((1, tile_h, nout_p), out_dtype))
    vmem_cap = _vmem_capacity_bytes() * 3 // 4
    if vmem_est > vmem_cap:
        raise ValueError(
            f"estimated VMEM {vmem_est} B exceeds {vmem_cap} B; use the halo'd row-tile path")
    vmem_limit = int(min(vmem_cap, max(4 << 20, 4 * vmem_est)))

    out_rows = pl.pallas_call(
        kernel,
        out_shape=jax.ShapeDtypeStruct((n, h_out, nout_p), out_dtype),
        grid_spec=pltpu.PrefetchScalarGridSpec(
            num_scalar_prefetch=0,
            grid=grid,
            in_specs=[
                pl.BlockSpec((1, hx, wcin), x_map),                 # resident per image
                pl.BlockSpec((kh_sz * wcin, nout_p), c_map),        # resident Toeplitz weights
                pl.BlockSpec((1, nout_p), c_map),                   # resident BN scale (f32)
                pl.BlockSpec((1, nout_p), c_map),                   # resident BN shift (f32)
            ],
            out_specs=pl.BlockSpec((1, tile_h, nout_p), o_map),
        ),
        compiler_params=pltpu.CompilerParams(
            dimension_semantics=dims,
            vmem_limit_bytes=vmem_limit,
        ),
    )(x_in, rhs, scale_row, shift_row)

    if nout_p != nout:
        out_rows = out_rows[:, :, :nout]
    return out_rows.reshape(n, h_out, w_out, cout)


def conv_bn_relu_nchw(x_nchw, weight_oihw, gamma, beta, running_mean, running_var, **kwargs):
    """PyTorch-layout convenience wrapper; prefer the NHWC API (channels-last end-to-end)."""
    y = conv_bn_relu_nhwc(jnp.transpose(x_nchw, (0, 2, 3, 1)), weight_oihw,
                          gamma, beta, running_mean, running_var, **kwargs)
    return jnp.transpose(y, (0, 3, 1, 2))


# ---------------------------------------------------------------------------
# references (NHWC)
# ---------------------------------------------------------------------------
def _reference_matched(x_nhwc, weight_oihw, gamma, beta, mean, var, *,
                       stride, padding, dilation, eps=1e-5, compute_dtype=jnp.bfloat16):
    """Same compute recipe as the kernel: bf16 conv, f32 acc, f32 scale/shift + ReLU."""
    w_hwio = jnp.transpose(weight_oihw.astype(jnp.float32), (2, 3, 1, 0)).astype(compute_dtype)
    inv_std = lax.rsqrt(var.astype(jnp.float32) + eps)
    scale = gamma.astype(jnp.float32) * inv_std
    shift = beta.astype(jnp.float32) - mean.astype(jnp.float32) * scale
    y = lax.conv_general_dilated(
        x_nhwc.astype(compute_dtype), w_hwio,
        window_strides=(stride, stride),
        padding=[(padding, padding), (padding, padding)],
        rhs_dilation=(dilation, dilation),
        dimension_numbers=("NHWC", "HWIO", "NHWC"),
        preferred_element_type=jnp.float32)
    return jnp.maximum(y * scale + shift, 0.0)


def _reference_f32(x_nhwc, weight_oihw, gamma, beta, mean, var, *,
                   stride, padding, dilation, eps=1e-5):
    """Full-precision conv -> BN(eval) -> ReLU (PyTorch module semantics)."""
    w_hwio = jnp.transpose(weight_oihw, (2, 3, 1, 0)).astype(jnp.float32)
    y = lax.conv_general_dilated(
        x_nhwc.astype(jnp.float32), w_hwio,
        window_strides=(stride, stride),
        padding=[(padding, padding), (padding, padding)],
        rhs_dilation=(dilation, dilation),
        dimension_numbers=("NHWC", "HWIO", "NHWC"),
        precision=lax.Precision.HIGHEST)
    inv_std = lax.rsqrt(var.astype(jnp.float32) + eps)
    return jnp.maximum((y - mean) * inv_std * gamma + beta, 0.0)


# ---------------------------------------------------------------------------
# demo / self-test
# ---------------------------------------------------------------------------
if __name__ == "__main__":
    # _ConvBatchNormReluBlock(inplanes=4, outplanes=8, kernel_size=3, stride=1, padding=1)
    N, CIN, H, W = 2, 4, 16, 16
    COUT, K = 8, 3
    STRIDE, PAD, DIL = 1, 1, 1

    key = jax.random.PRNGKey(0)
    kx, kwt, kg, kb, km, kv = jax.random.split(key, 6)

    # channels-last activations end-to-end (no NCHW<->NHWC HBM passes)
    x_nhwc = jax.random.normal(kx, (N, H, W, CIN), dtype=jnp.float32)
    weight = jax.random.normal(kwt, (COUT, CIN, K, K), dtype=jnp.float32) * 0.1
    gamma = jax.random.uniform(kg, (COUT,), dtype=jnp.float32, minval=0.5, maxval=1.5)
    beta = jax.random.normal(kb, (COUT,), dtype=jnp.float32) * 0.1
    running_mean = jax.random.normal(km, (COUT,), dtype=jnp.float32) * 0.1
    running_var = jax.random.uniform(kv, (COUT,), dtype=jnp.float32, minval=0.5, maxval=1.5)

    out = conv_bn_relu_nhwc(x_nhwc, weight, gamma, beta, running_mean, running_var,
                            stride=STRIDE, padding=PAD, dilation=DIL)
    out = jax.block_until_ready(out)
    assert out.shape == (N, H, W, COUT), out.shape
    assert out.dtype == jnp.bfloat16, out.dtype
    out_f32 = out.astype(jnp.float32)

    # (a) matched-precision check (bf16 conv, f32 acc, f32 BN epilogue; kernel adds bf16 store)
    ref_m = _reference_matched(x_nhwc, weight, gamma, beta, running_mean, running_var,
                               stride=STRIDE, padding=PAD, dilation=DIL)
    err_m = float(jnp.max(jnp.abs(out_f32 - ref_m)))
    assert jnp.allclose(out_f32, ref_m, atol=2.5e-2, rtol=2.5e-2), err_m

    # (b) full-precision module semantics (bf16 compute + bf16 output => relaxed tolerance)
    ref_f = _reference_f32(x_nhwc, weight, gamma, beta, running_mean, running_var,
                           stride=STRIDE, padding=PAD, dilation=DIL)
    err_f = float(jnp.max(jnp.abs(out_f32 - ref_f)))
    assert jnp.allclose(out_f32, ref_f, atol=5e-2, rtol=5e-2), err_f

    print("KERNEL_OK")
</pallas_src>

<mosaic_0001>
module attributes {stable_mosaic.version = 11 : i64} {
  func.func @kernel(%arg0: i32, %arg1: memref<1x16x64xbf16, #tpu.memory_space<vmem>>, %arg2: memref<192x128xbf16, #tpu.memory_space<vmem>>, %arg3: memref<1x128xf32, #tpu.memory_space<vmem>>, %arg4: memref<1x128xf32, #tpu.memory_space<vmem>>, %arg5: memref<1x16x128xbf16, #tpu.memory_space<vmem>>) attributes {dimension_semantics = [#tpu.dimension_semantics<parallel>], iteration_bounds = array<i64: 2>, scalar_prefetch = 0 : i64, scratch_operands = 0 : i64, tpu.core_type = #tpu.core_type<tc>, window_params = [{transform_indices = @transform_0, window_bounds = array<i64: 1, 16, 64>}, {pipeline_mode = #tpu.pipeline_mode<synchronous>, transform_indices = @transform_1, window_bounds = array<i64: 192, 128>}, {pipeline_mode = #tpu.pipeline_mode<synchronous>, transform_indices = @transform_2, window_bounds = array<i64: 1, 128>}, {pipeline_mode = #tpu.pipeline_mode<synchronous>, transform_indices = @transform_3, window_bounds = array<i64: 1, 128>}, {transform_indices = @transform_4, window_bounds = array<i64: 1, 16, 128>}]} {
    %c0 = arith.constant 0 : index
    %c0_0 = arith.constant 0 : index
    %c0_1 = arith.constant 0 : index
    %0 = vector.load %arg1[%c0, %c0_0, %c0_1] : memref<1x16x64xbf16, #tpu.memory_space<vmem>>, vector<1x15x64xbf16>
    %1 = vector.shape_cast %0 : vector<1x15x64xbf16> to vector<15x64xbf16>
    %cst = arith.constant 0.000000e+00 : bf16
    %2 = vector.broadcast %cst : bf16 to vector<1x64xbf16>
    %3 = tpu.concatenate %2, %1 in 0 : vector<1x64xbf16>, vector<15x64xbf16> -> vector<16x64xbf16>
    %c0_2 = arith.constant 0 : index
    %c0_3 = arith.constant 0 : index
    %c0_4 = arith.constant 0 : index
    %4 = vector.load %arg1[%c0_2, %c0_3, %c0_4] : memref<1x16x64xbf16, #tpu.memory_space<vmem>>, vector<1x16x64xbf16>
    %5 = vector.shape_cast %4 : vector<1x16x64xbf16> to vector<16x64xbf16>
    %c0_5 = arith.constant 0 : index
    %c1 = arith.constant 1 : index
    %c0_6 = arith.constant 0 : index
    %6 = vector.load %arg1[%c0_5, %c1, %c0_6] : memref<1x16x64xbf16, #tpu.memory_space<vmem>>, vector<1x15x64xbf16>
    %7 = vector.shape_cast %6 : vector<1x15x64xbf16> to vector<15x64xbf16>
    %cst_7 = arith.constant 0.000000e+00 : bf16
    %8 = vector.broadcast %cst_7 : bf16 to vector<1x64xbf16>
    %9 = tpu.concatenate %7, %8 in 0 : vector<15x64xbf16>, vector<1x64xbf16> -> vector<16x64xbf16>
    %10 = tpu.concatenate %3, %5, %9 in 1 : vector<16x64xbf16>, vector<16x64xbf16>, vector<16x64xbf16> -> vector<16x192xbf16>
    %c0_8 = arith.constant 0 : index
    %c0_9 = arith.constant 0 : index
    %11 = vector.load %arg2[%c0_8, %c0_9] : memref<192x128xbf16, #tpu.memory_space<vmem>>, vector<192x128xbf16>
    %cst_10 = arith.constant dense<0.000000e+00> : vector<16x128xf32>
    %12 = tpu.matmul %10, %11, %cst_10 {dimension_numbers = #tpu.dot_dimension_numbers<[1], [0], [0], [1], [0, 0, 1, 1], [], []>} : vector<16x192xbf16>, vector<192x128xbf16>, vector<16x128xf32> -> vector<16x128xf32>
    %c0_11 = arith.constant 0 : index
    %c0_12 = arith.constant 0 : index
    %13 = vector.load %arg3[%c0_11, %c0_12] : memref<1x128xf32, #tpu.memory_space<vmem>>, vector<1x128xf32>
    %14 = vector.broadcast %13 : vector<1x128xf32> to vector<16x128xf32>
    %15 = arith.mulf %12, %14 : vector<16x128xf32>
    %c0_13 = arith.constant 0 : index
    %c0_14 = arith.constant 0 : index
    %16 = vector.load %arg4[%c0_13, %c0_14] : memref<1x128xf32, #tpu.memory_space<vmem>>, vector<1x128xf32>
    %17 = vector.broadcast %16 : vector<1x128xf32> to vector<16x128xf32>
    %18 = arith.addf %15, %17 : vector<16x128xf32>
    %cst_15 = arith.constant 0.000000e+00 : f32
    %19 = vector.broadcast %cst_15 : f32 to vector<16x128xf32>
    %20 = arith.maximumf %18, %19 : vector<16x128xf32>
    %21 = arith.truncf %20 : vector<16x128xf32> to vector<16x128xbf16>
    %c0_16 = arith.constant 0 : index
    %c0_17 = arith.constant 0 : index
    %c0_18 = arith.constant 0 : index
    %22 = vector.load %arg5[%c0_16, %c0_17, %c0_18] : memref<1x16x128xbf16, #tpu.memory_space<vmem>>, vector<1x16x128xbf16>
    %23 = vector.shape_cast %22 : vector<1x16x128xbf16> to vector<16x128xbf16>
    %24 = vector.shape_cast %21 : vector<16x128xbf16> to vector<1x16x128xbf16>
    tpu.vector_store %arg5[%c0_16, %c0_17, %c0_18], %24 {strides = array<i32>} : memref<1x16x128xbf16, #tpu.memory_space<vmem>>, vector<1x16x128xbf16>,
    return
  }
  func.func @transform_0(%arg0: i32) -> (i32, i32, i32) {
    %c0_i32 = arith.constant 0 : i32
    %c0_i32_0 = arith.constant 0 : i32
    %c0_i32_1 = arith.constant 0 : i32
    return %arg0, %c0_i32, %c0_i32_0 : i32, i32, i32
  }
  func.func @transform_1(%arg0: i32) -> (i32, i32) {
    %c0_i32 = arith.constant 0 : i32
    %c0_i32_0 = arith.constant 0 : i32
    %c0_i32_1 = arith.constant 0 : i32
    return %c0_i32, %c0_i32_0 : i32, i32
  }
  func.func @transform_2(%arg0: i32) -> (i32, i32) {
    %c0_i32 = arith.constant 0 : i32
    %c0_i32_0 = arith.constant 0 : i32
    %c0_i32_1 = arith.constant 0 : i32
    return %c0_i32, %c0_i32_0 : i32, i32
  }
  func.func @transform_3(%arg0: i32) -> (i32, i32) {
    %c0_i32 = arith.constant 0 : i32
    %c0_i32_0 = arith.constant 0 : i32
    %c0_i32_1 = arith.constant 0 : i32
    return %c0_i32, %c0_i32_0 : i32, i32
  }
  func.func @transform_4(%arg0: i32) -> (i32, i32, i32) {
    %c0_i32 = arith.constant 0 : i32
    %c0_i32_0 = arith.constant 0 : i32
    %c0_i32_1 = arith.constant 0 : i32
    return %arg0, %c0_i32, %c0_i32_0 : i32, i32, i32
  }
}

</mosaic_0001>

<bundles_post_ra>
// kernel: tpu_custom_call.1
= control target key start
LH: loop header
LB: loop body
LE: loop exit
PB: predicated region body
PF: predicated region fallthrough
CT: control target
= control target key end

     0   :  { %9 = vsyncpa [#allocation3], 0  ;;  %s1035_s0 = inlined_call_operand.hbm [shape: bf16[2,16,64], index: 0, kind: input, shape index: {}]   ;;  %s1036_s1 = inlined_call_operand.hbm [shape: bf16[192,128], index: 1, kind: input, shape index: {}]   ;;  %s1037_s2 = inlined_call_operand.vmem [shape: f32[1,128], index: 2, kind: input, shape index: {}]   ;;  %s1038_s3 = inlined_call_operand.vmem [shape: f32[1,128], index: 3, kind: input, shape index: {}]   ;;  %s1039_s4 = inlined_call_operand.hbm [shape: bf16[2,16,128], index: 4, kind: output, shape index: {}]  }
   0x1   :  { %11 = vsyncpa [#allocation3 + $0x1], 0 }
   0x2   :  { %12 = vsyncpa [#allocation6], 0 }
   0x3   :  { %13 = vsyncpa [#allocation4], 0 }
   0x4   :  { %15 = vsyncpa [#allocation4 + $0x1], 0  ;;  %s813_s15 = smov 0   ;;  %s815_s16 = smov 0  }
   0x5   :  { %s817_s17 = smov 0   ;;  %s819_s18 = smov 0  }
   0x6 LB: > { %s834_s19 = sadd.s32 4294967295, %s778_s18   ;;  %s532_s20 = sadd.s32 4294967294, %s778_s18   ;;  %s778_s18 = sphi %s819_s18, %s1059_s18   ;;  %s774_s17 = sphi %s817_s17, %s1058_s17   ;;  %s770_s16 = sphi %s815_s16, %s1057_s16   ;;  %s766_s15 = sphi %s813_s15, %s1056_s15  }
   0x7   : > { %p41_p0 = scmp.ne.s32.totalorder %s770_s16, %s766_s15  ;;  %p1040_p1 = scmp.eq.s32.totalorder %s834_s19, 0 }
   0x8   : > { %p134_p3 = scmp.eq.s32.totalorder %s532_s20, 1  ;;  %p533_p5 = scmp.ge.s32.totalorder %s778_s18, 1 }
   0x9   : > { %p843_p4 = por %p1040_p1, %p41_p0  ;;  %p141_p7 = scmp.lt.s32.totalorder %s778_s18, 3 }
   0xa   : > { %p848_p6 = por %p134_p3, %p41_p0  ;;  %s780_s24 = smov [#allocation5]  }
   0xb   : > { %s1043_s21 = scalar_select %p843_p4, 1, 0 }
   0xc   : > { %s1044_s22 = scalar_select %p848_p6, 1, 0 }
   0xd   : > { %p853_p8 = pnand %p533_p5, %p141_p7  ;;  %s153_s25 = sshll.u32 %s780_s24, 4  ;;  %s857_s25 = int_to_ptr.vmem [resolvable:$true] %s153_s25 }
   0xe   : > { %s869_s27 = sadd.s32 1, %s778_s18   ;;  %s28_s28 = sadd.s32 1, %s774_s17 }
   0xf   : > { %s1045_s23 = scalar_select %p853_p8, 1, 0 }
  0x10   : > { %p583_p9 = pneg %p853_p8  ;;  %s25_s29 = ssub.s32 %s778_s18, %s869_s27 }
  0x11   : > { %s650_s6 = scalar_lea.hbm %s1036_s1, 1536 }
  0x12   : > { %p864_p11 = pnand %p583_p9, %p1040_p1  ;;  %p651_p12 = scmp.ne.s32.totalorder %s1036_s1, %s650_s6 }
  0x13   : > { %p657_p5 = scmp.lt.u32.totalorder %s650_s6, %s1036_s1 }
  0x14   : > { %p652_p13 = pneg %p864_p11 }
  0x16   : > { %p653_p0 = pnand %p652_p13, %p651_p12 }
  0x18   : > { %p654_p3 = pneg %p653_p0 }
  0x1a   : > { %p659_p7 = pnand %p657_p5, %p654_p3 }
  0x1c   : > { %662 = shalt.err (!%p659_p7)
}
  0x1d   : > { %s663_s11 = scalar_lea.vmem %s857_s25, 1536  ;;  %p671_p2 = scmp.lt.s32.totalorder %s857_s25, %s857_s25 }
  0x1e   : > { %p664_p9 = scmp.ne.s32.totalorder %s857_s25, %s663_s11  ;;  %p672_p6 = scmp.lt.s32.totalorder %s663_s11, %s663_s11 }
  0x20   : > { %p666_p10 = pnand %p664_p9, %p652_p13  ;;  %p673_p4 = por %p672_p6, %p671_p2 }
  0x22   : > { %p667_p1 = pneg %p666_p10 }
  0x24   : > { %p674_p8 = pnand %p673_p4, %p667_p1 }
  0x26   : > { %677 = shalt.err (!%p674_p8)
}
  0x27   : > { %s781_s12 = smov 64   ;;  %s782_s13 = smov 4  }
  0x28   : > { %586 = dma.hbm_to_vmem [thread:$0]  (!%p864_p11), %s1036_s1, 1536, %s857_s25, [#allocation6], %s781_s12, %s781_s12, %s782_s13  }
  0x29   : > { %p26_p1 = scmp.eq.s32.totalorder %s25_s29, 0  ;;  %p35_p2 = scmp.ne.s32.totalorder %s774_s17, %s770_s16 }
  0x2a   : > { %p36_p4 = scmp.eq.s32.totalorder %s778_s18, 0  ;;  %p596_p6 = scmp.lt.s32.totalorder %s778_s18, 2 }
  0x2b   : > { %s903_s24 = scalar_select %p26_p1, %s774_s17, %s28_s28  }
  0x2c   : > { %p37_p8 = por %p36_p4, %p35_p2  ;;  %p1047_p10 = scmp.eq.s32.totalorder %s834_s19, 1 }
  0x2d   : > { %s173_s26 = sand.u32 1, %s774_s17   ;;  %s566_s5 = sshll.u32 %s778_s18, 7 }
  0x2e   : > { %p907_p12 = por %p1047_p10, %p35_p2  ;;  %s536_s6 = sshll.u32 %s173_s26, 3 }
  0x2f   : > { %s916_s9 = scalar_lea.hbm %s1035_s0, %s566_s5  ;;  %s177_s25 = scalar_lea.vmem [#allocation2], %s536_s6 }
  0x30   : > { %s184_s28 = sshll.u32 %s177_s25, 4  ;;  %p918_p11 = pnand %p596_p6, %p37_p8  ;;  %s922_s28 = int_to_ptr.vmem [resolvable:$true] %s184_s28 }
  0x31   : > { %s924_s10 = scalar_lea.sflag [#allocation3], %s173_s26  ;;  %s678_s11 = scalar_lea.hbm %s916_s9, 128 }
  0x32   : > { %p679_p13 = scmp.ne.s32.totalorder %s916_s9, %s678_s11  ;;  %p680_p0 = pneg %p918_p11 }
  0x33   : > { %s683_s5 = scalar_lea.hbm %s1035_s0, 256  ;;  %p684_p7 = scmp.lt.u32.totalorder %s916_s9, %s1035_s0 }
  0x34   : > { %p681_p3 = pnand %p680_p0, %p679_p13  ;;  %p685_p9 = scmp.lt.u32.totalorder %s683_s5, %s678_s11 }
  0x35   : > { %p687_p2 = scmp.lt.u32.totalorder %s678_s11, %s916_s9 }
  0x36   : > { %p682_p5 = pneg %p681_p3  ;;  %p686_p1 = por %p685_p9, %p684_p7 }
  0x38   : > { %p688_p4 = por %p687_p2, %p686_p1 }
  0x3a   : > { %p689_p6 = pnand %p688_p4, %p682_p5 }
  0x3c   : > { %692 = shalt.err (!%p689_p6)
}
  0x3d   : > { %s693_s26 = scalar_lea.vmem %s922_s28, 128  ;;  %s783_s8 = smov [#allocation2]  }
  0x3e   : > { %p694_p8 = scmp.ne.s32.totalorder %s922_s28, %s693_s26  ;;  %s698_s25 = sshll.u32 %s783_s8, 4  ;;  %s699_s25 = int_to_ptr.vmem [resolvable:$false] %s698_s25 }
  0x3f   : > { %s700_s14 = scalar_lea.vmem %s699_s25, 256  ;;  %p701_p3 = scmp.lt.s32.totalorder %s922_s28, %s699_s25 }
  0x40   : > { %p696_p10 = pnand %p694_p8, %p680_p0  ;;  %p702_p7 = scmp.lt.s32.totalorder %s700_s14, %s693_s26 }
  0x42   : > { %p697_p13 = pneg %p696_p10  ;;  %p703_p9 = por %p702_p7, %p701_p3 }
  0x44   : > { %p704_p1 = pnand %p703_p9, %p697_p13 }
  0x46   : > { %707 = shalt.err (!%p704_p1)
}
  0x47   : > { %590 = dma.hbm_to_vmem [thread:$0]  (!%p918_p11), %s916_s9, 128, %s922_s28, %s924_s10, %s781_s12, %s781_s12, %s782_s13  }
  0x48   : > { %p1050_p0 = scmp.ne.s32.totalorder %s1045_s23, 0 }
  0x49   : > { %s958_s11 = sand.u32 (!%p1050_p0), 1, %s770_s16   ;;  %p1051_p5 = scmp.ne.s32.totalorder (!%p1050_p0), %s1043_s21, 0 }
  0x4a   : > { %196 = sbr.rel (%p1050_p0) target bundleno = 439 (0x1b7), region = 36  ;;  %s540_s20 = sshll.u32 (!%p1050_p0), %s958_s11, 3 }
  0x4b   : > { %s199_s5 = scalar_lea.sflag (!%p1050_p0), [#allocation3], %s958_s11  ;;  %s202_s29 = scalar_lea.vmem (!%p1050_p0), [#allocation2], %s540_s20 }
  0x51   : > { %753 = dma.done.wait (%p1051_p5), %s199_s5, 128  }
  0x52   : > { %755 = vsyncadd (%p1051_p5), %s199_s5, 4294967168  ;;  %p1052_p11 = scmp.eq.s32.totalorder %s834_s19, 0 }
  0x54   : > { %757 = dma.done.wait (%p1052_p11), [#allocation6], 1536   ;;  %p1053_p2 = pmov %p1052_p11 }
  0x55   : > { %v784_v0 = vmov 0   ;;  %vm255_vm0 = vsmask.f32 7424  ;;  %v637_v1 = vld [vmem:[%s202_s29] sm:$0xff]   ;;  %v638_v2 = vld [vmem:[#allocation5] sm:$0xff]   ;;  %s785_s23 = smov 64  }
  0x56   : > { %759 = vsyncadd (%p1053_p2), [#allocation6], 4294965760  ;;  %364 = vmatprep.subr.bf16.mxu0 %v784_v0  ;;  %258 = vrot.lane.b32.xlu0 %v637_v1, %s785_s23  ;;  %v240_v3 = vshrl.u32 %v637_v1, 16  ;;  %vm254_vm1 = vcmask 1047552   ;;  %v639_v4 = vld [vmem:[#allocation5 + $0x8] sm:$0xff]   ;;  %v243_v5 = vshll.u32 %v637_v1, 16 }
  0x57   : > { %365 = vmatpush1.bf16.msra.mxu0 %v638_v2  ;;  %vm256_vm2 = vmand %vm254_vm1, %vm255_vm0  ;;  %v640_v9 = vld [vmem:[#allocation5 + $0x10] sm:$0xff]   ;;  %vm260_vm3 = vcmask 523264   ;;  %v641_v12 = vld [vmem:[#allocation5 + $0x18] sm:$0xff]   ;;  %vm247_vm4 = vcmask 1040384   ;;  %vm248_vm5 = vsmask.f32 256 }
  0x58   : > { %366 = vmatprep.subr.bf16.mxu0 %v784_v0  ;;  %v242_v6 = vrot.slane %v240_v3, 7  ;;  %v251_v7 = vrot.slane %v243_v5, 1  ;;  %v642_v13 = vld [vmem:[#allocation5 + $0x20] sm:$0xff]   ;;  %v643_v14 = vld [vmem:[#allocation5 + $0x28] sm:$0xff]   ;;  %v644_v15 = vld [vmem:[#allocation5 + $0x30] sm:$0xff]   ;;  %s569_s28 = sshll.u32 %s834_s19, 7 }
  0x59   : > { %v645_v16 = vld [vmem:[#allocation5 + $0x38] sm:$0xff]   ;;  %v646_v17 = vld [vmem:[#allocation5 + $0x40] sm:$0xff]   ;;  %v647_v18 = vld [vmem:[#allocation5 + $0x48] sm:$0xff]   ;;  %s230_s10 = scalar_lea.vmem [#allocation7], %s540_s20  ;;  %s987_s8 = scalar_lea.hbm %s1039_s4, %s569_s28 }
  0x5a   : > { %v245_v8 = vor.u32 %v243_v5, %v242_v6  ;;  %v252_v10 = vor.u32 %v251_v7, %v240_v3  ;;  %v648_v19 = vld [vmem:[#allocation5 + $0x50] sm:$0xff]   ;;  %v649_v20 = vld [vmem:[#allocation5 + $0x58] sm:$0xff]   ;;  %vm249_vm6 = vmand %vm247_vm4, %vm248_vm5  ;;  %s449_s6 = sshll.u32 %s230_s10, 4  ;;  %s436_s25 = scalar_lea.sflag [#allocation4], %s958_s11  ;;  %s989_s6 = int_to_ptr.vmem [resolvable:$true] %s449_s6 }
  0x5b   : > { %367 = vmatpush1.bf16.msra.mxu0 %v639_v4  ;;  %v557_v24 = vld [vmem:[%s1037_s2] ss:$0 sm:$0xff]  ;;  %s708_s14 = scalar_lea.vmem %s989_s6, 128  ;;  %s786_s19 = smov [#allocation7]  }
  0x5c   : > { %368 = vmatprep.subr.bf16.mxu0 %v784_v0  ;;  %v257_v11 = vsel %vm256_vm2, %v252_v10, 0  ;;  %v250_v21 = vsel %vm249_vm6, 0, %v245_v8  ;;  %v558_v26 = vld [vmem:[%s1038_s3] ss:$0 sm:$0xff]  ;;  %p709_p4 = scmp.ne.s32.totalorder %s989_s6, %s708_s14  ;;  %s712_s20 = sshll.u32 %s786_s19, 4  ;;  %s713_s20 = int_to_ptr.vmem [resolvable:$false] %s712_s20 }
  0x5d   : > { %556 = vmatprep.mubr.msk.bf16.mxu0 %vm260_vm3, %v257_v11  ;;  %s714_s5 = scalar_lea.vmem %s713_s20, 256  ;;  %p715_p10 = scmp.lt.s32.totalorder %s989_s6, %s713_s20 }
  0x5e   : > { %p710_p6 = pnand %p709_p4, %p907_p12  ;;  %p716_p13 = scmp.lt.s32.totalorder %s714_s5, %s708_s14 }
  0x5f   : > { %369 = vmatpush1.bf16.msra.mxu0 %v640_v9 }
  0x60   : > { %370 = vmatprep.subr.bf16.mxu0 %v784_v0  ;;  %p711_p8 = pneg %p710_p6  ;;  %p717_p3 = por %p716_p13, %p715_p10 }
  0x62   : > { %p718_p7 = pnand %p717_p3, %p711_p8 }
  0x63   : > { %371 = vmatpush1.bf16.msra.mxu0 %v641_v12 }
  0x64   : > { %372 = vmatprep.subr.bf16.mxu0 %v784_v0 }
  0x67   : > { %373 = vmatpush1.bf16.msra.mxu0 %v642_v13 }
  0x68   : > { %374 = vmatprep.subr.bf16.mxu0 %v784_v0 }
  0x6b   : > { %375 = vmatpush1.bf16.msra.mxu0 %v643_v14 }
  0x6c   : > { %376 = vmatprep.subr.bf16.mxu0 %v784_v0 }
  0x6f   : > { %377 = vmatpush1.bf16.msra.mxu0 %v644_v15 }
  0x70   : > { %378 = vmatprep.subr.bf16.mxu0 %v784_v0 }
  0x73   : > { %379 = vmatpush1.bf16.msra.mxu0 %v645_v16 }
  0x74   : > { %380 = vmatprep.subr.bf16.mxu0 %v784_v0 }
  0x77   : > { %381 = vmatpush1.bf16.msra.mxu0 %v646_v17 }
  0x78   : > { %382 = vmatprep.subr.bf16.mxu0 %v784_v0 }
  0x7b   : > { %383 = vmatpush1.bf16.msra.mxu0 %v647_v18 }
  0x7c   : > { %384 = vmatprep.subr.bf16.mxu0 %v784_v0 }
  0x7f   : > { %385 = vmatpush1.bf16.msra.mxu0 %v648_v19 }
  0x80   : > { %386 = vmatprep.subr.bf16.mxu0 %v784_v0 }
  0x83   : > { %387 = vmatpush1.bf16.msra.mxu0 %v649_v20 }
  0xc8   : > { %v259_v22 = vpop.permute.xlu0 %258 }
  0xc9   : > { %v263_v23 = vsel %vm260_vm3, %v250_v21, %v259_v22 }
  0xca   : > { %397 = vmatmul.mubr.bf16.vlgmr.msra.gmra.mrb[0].mxu0 %v263_v23 }
 0x19d   : > { %v398_v25 = vpop.f32.mrb[0].mxu0 }
 0x19e   : > { %v412_v27 = vmul.f32 %v557_v24, %v398_v25  ;;  %v400_v28 = vpop.f32.mrb[1].mxu0 }
 0x19f   : > { %v401_v29 = vpop.f32.mrb[2].mxu0 }
 0x1a0   : > { %v421_v30 = vadd.f32 %v558_v26, %v412_v27  ;;  %v413_v31 = vmul.f32 %v557_v24, %v401_v29  ;;  %v403_v32 = vpop.f32.mrb[3].mxu0 }
 0x1a2   : > { %v422_v33 = vadd.f32 %v558_v26, %v413_v31  ;;  %v423_v34 = vmax.f32 %v421_v30, 0.0 }
 0x1a4   : > { %v424_v35 = vmax.f32 %v422_v33, 0.0 }
 0x1a6   : > { %v573_v36 = vpack.c.bf16 %v424_v35, %v423_v34 }
 0x1a8   : > { %574 = vst [vmem:[%s230_s10] sm:$0xff] %v573_v36  }
 0x1a9   : > { %721 = shalt.err (!%p718_p7)
}
 0x1aa   : > { %s722_s29 = scalar_lea.hbm %s987_s8, 128  ;;  %s726_s13 = scalar_lea.hbm %s1039_s4, 256 }
 0x1ab   : > { %p723_p9 = scmp.ne.s32.totalorder %s987_s8, %s722_s29  ;;  %p727_p5 = scmp.lt.u32.totalorder %s987_s8, %s1039_s4 }
 0x1ac   : > { %p728_p11 = scmp.lt.u32.totalorder %s726_s13, %s722_s29  ;;  %p730_p4 = scmp.lt.u32.totalorder %s722_s29, %s987_s8 }
 0x1ad   : > { %p724_p1 = pnand %p723_p9, %p907_p12 }
 0x1ae   : > { %p729_p2 = por %p728_p11, %p727_p5 }
 0x1af   : > { %p725_p0 = pneg %p724_p1 }
 0x1b0   : > { %p731_p6 = por %p730_p4, %p729_p2 }
 0x1b2   : > { %p732_p8 = pnand %p731_p6, %p725_p0 }
 0x1b4   : > { %735 = shalt.err (!%p732_p8)
}
 0x1b5   : > { %s787_s10 = smov 4  }
 0x1b6   : > { %581 = dma.vmem_to_hbm [thread:$0]  (%p907_p12), %s989_s6, 128, %s987_s8, %s436_s25, %s785_s23, %s785_s23, %s787_s10  }
 0x1b7 PF: > { %s464_s7 = sand.u32 1, %s766_s15   ;;  %p1054_p10 = scmp.ne.s32.totalorder %s1044_s22, 0 }
 0x1b8   : > { %p1055_p13 = scmp.ge.s32.totalorder %s778_s18, 2  ;;  %s465_s26 = scalar_lea.sflag [#allocation4], %s464_s7 }
 0x1ba   : > { %p592_p3 = pnand %p1055_p13, %p1054_p10 }
 0x1bc   : > { %761 = dma.done.wait (!%p592_p3), %s465_s26, 128  }
 0x1bd   : > { %763 = vsyncadd (!%p592_p3), %s465_s26, 4294967168  ;;  %p18_p7 = scmp.ge.s32.totalorder %s869_s27, 4   ;;  %s1056_s15 = smov %s770_s16 }
 0x1be   : > { %s1057_s16 = smov %s774_s17  ;;  %s1058_s17 = smov %s903_s24 }
 0x1bf   : > { %s1059_s18 = smov %s869_s27  ;;  %20 = sbr.rel (!%p18_p7) target bundleno = 6 (0x6), region = 85 }
 0x1c6   :  { %470 = vsyncpa [#allocation3], 1 }
 0x1c7   :  { %472 = vsyncpa [#allocation3 + $0x1], 1 }
 0x1c8   :  { %473 = vsyncpa [#allocation6], 1 }
 0x1c9   :  { %474 = vsyncpa [#allocation4], 1 }
 0x1ca   :  { %476 = vsyncpa [#allocation4 + $0x1], 1 }

</bundles_post_ra>
